<compile_context>
chip_gen: v7x
topology: tpu7x:2x2x1
jax: 0.10.0
libtpu: 0.0.40
codegen_flags: <defaults>
</compile_context>

<pallas_src>
import functools

import jax
import jax.numpy as jnp
from jax import lax
from jax.experimental import pallas as pl
from jax.experimental.pallas import tpu as pltpu

BETA = 0.999
LANE = 512                      # lane width of the flat EMA buffer
MAX_TILE_ROWS = 2048            # 2048 x 512 x f32 = 4 MiB per tile (~86% of HBM roofline)
VMEM_LIMIT = 32 * 1024 * 1024   # fits v5e/v6e (128 MiB) and v7x (64 MiB) comfortably


def _num_tensorcores():
    """Best-effort TC-per-device count; a wrong guess only changes grid shape, not results."""
    try:
        kind = jax.devices()[0].device_kind.lower()
    except Exception:
        return 2
    single_tc = any(t in kind for t in ("v5e", "v5 lite", "v5lite", "v6e", "v6 lite", "v6lite"))
    return 1 if single_tc else 2


# --------------------------------------------------------------------------
# Pallas kernel 1: EMA parameter update   e <- beta*e + (1-beta)*o   (in place)
# --------------------------------------------------------------------------
def _ema_update_kernel(ema_ref, orig_ref, beta_ref, out_ref):
    beta = beta_ref[0]                                   # f32 scalar from SMEM
    out_ref[...] = beta * ema_ref[...] + (1.0 - beta) * orig_ref[...]


def ema_update_flat(ema_flat, orig_flat, beta_arr, *, tile_rows):
    """ema_flat/orig_flat: f32[rows, LANE] (padded).  Returns the updated buffer (aliased)."""
    rows, lane = ema_flat.shape
    n_elems = rows * lane
    return pl.pallas_call(
        _ema_update_kernel,
        out_shape=jax.ShapeDtypeStruct((rows, lane), jnp.float32),
        grid=(rows // tile_rows,),
        in_specs=[
            pl.BlockSpec((tile_rows, lane), lambda i: (i, 0)),        # ema tile (operand 0)
            pl.BlockSpec((tile_rows, lane), lambda i: (i, 0)),        # orig tile
            pl.BlockSpec(memory_space=pltpu.MemorySpace.SMEM),        # beta (1,) f32
        ],
        out_specs=pl.BlockSpec((tile_rows, lane), lambda i: (i, 0)),
        # EMA buffer is operand 0 -> alias {0: 0}; in-place update of the flat state.
        input_output_aliases={0: 0},
        compiler_params=pltpu.CompilerParams(
            dimension_semantics=("parallel",),
            vmem_limit_bytes=VMEM_LIMIT,
        ),
        cost_estimate=pl.CostEstimate(
            flops=3 * n_elems, transcendentals=0,
            bytes_accessed=3 * n_elems * 4 + 4),
    )(ema_flat, orig_flat, beta_arr)


# --------------------------------------------------------------------------
# Pallas kernel 2: Conv2d(3x3, pad=1) + bias + ReLU.
#   x_ref: (bt, C, sp)     zero-padded images, spatial flattened (row stride Wp), lane-padded
#   w_ref: (Cout, 9*C)     column (di*3+dj)*C + c  <->  weight[o, c, di, dj]
#   b_ref: (Cout, 1)
#   o_ref: (bt, Cout, sp)  lane-dense (sp % 128 == 0); junk columns sliced off outside
#   p_ref: (9*C, bt*sp)    VMEM patch scratch (rolled taps), built fresh every grid step
# --------------------------------------------------------------------------
def _conv_relu_kernel(x_ref, w_ref, b_ref, o_ref, p_ref, *, offsets, sp, bt, c):
    # Build the patch tensor: 9 shifted copies per image via XLU rolls + aligned stores.
    for bi in range(bt):                                  # statically unrolled (bt is small)
        x = x_ref[bi]                                     # (C, sp)
        for t, off in enumerate(offsets):
            shifted = x if off == 0 else pltpu.roll(x, sp - off, 1)   # out[q] = x[q + off]
            p_ref[pl.ds(t * c, c), pl.ds(bi * sp, sp)] = shifted
    # One fat MXU dot: (Cout, 9C) @ (9C, bt*sp), K = 9*C = 36.
    acc = jnp.dot(w_ref[...], p_ref[...], preferred_element_type=jnp.float32)
    act = jnp.maximum(acc + b_ref[...], 0.0)
    for bi in range(bt):                                  # lane-dense, unmasked stores
        o_ref[bi] = act[:, bi * sp:(bi + 1) * sp].astype(o_ref.dtype)


def conv_relu_pallas(x, weight, bias):
    """x: (N, C, H, W) NCHW, weight: (Cout, C, 3, 3) OIHW, bias: (Cout,)."""
    N, C, H, W = x.shape
    Cout = weight.shape[0]
    Hp, Wp = H + 2, W + 2
    sp = ((Hp * Wp + 127) // 128) * 128                   # lane-dense padded spatial extent

    # Generation-aware batch tiling: fold the whole batch on 1-TC chips (v5e/v6e),
    # two parallel steps of N/2 on 2-TC chips (v7x).  Cap the block by VMEM footprint.
    n_tc = _num_tensorcores()
    bt = max(1, -(-N // n_tc))
    per_img_bytes = (C + Cout + 9 * C) * sp * 4           # x block + out block + patch scratch
    bt = max(1, min(bt, (8 * 1024 * 1024) // per_img_bytes))
    grid_n = -(-N // bt)
    Np = grid_n * bt

    # Spatial pad -> (free) flatten -> lane pad.  XLA fuses this pad/reshape/pad chain into a
    # single copy into the final (Np, C, sp) buffer.
    xp = jnp.pad(x, ((0, Np - N), (0, 0), (1, 1), (1, 1))).reshape(Np, C, Hp * Wp)
    xf = jnp.pad(xp, ((0, 0), (0, 0), (0, sp - Hp * Wp)))

    # (Cout, C, 3, 3) -> (Cout, 3, 3, C) -> (Cout, 9*C): column (di*3+dj)*C + c.
    w_mat = weight.transpose(0, 2, 3, 1).reshape(Cout, 9 * C).astype(jnp.float32)
    b_col = bias.reshape(Cout, 1).astype(jnp.float32)

    offsets = tuple(di * Wp + dj for di in range(3) for dj in range(3))

    flops = 2 * Np * Cout * (9 * C) * sp + 2 * Np * Cout * sp
    bytes_accessed = 4 * (Np * C * sp + Np * Cout * sp + Cout * 9 * C + Cout)

    out = pl.pallas_call(
        functools.partial(_conv_relu_kernel, offsets=offsets, sp=sp, bt=bt, c=C),
        out_shape=jax.ShapeDtypeStruct((Np, Cout, sp), jnp.float32),
        grid=(grid_n,),
        in_specs=[
            pl.BlockSpec((bt, C, sp), lambda n: (n, 0, 0)),
            pl.BlockSpec((Cout, 9 * C), lambda n: (0, 0)),
            pl.BlockSpec((Cout, 1), lambda n: (0, 0)),
        ],
        out_specs=pl.BlockSpec((bt, Cout, sp), lambda n: (n, 0, 0)),
        scratch_shapes=[pltpu.VMEM((9 * C, bt * sp), jnp.float32)],
        compiler_params=pltpu.CompilerParams(
            dimension_semantics=("parallel",),
            vmem_limit_bytes=VMEM_LIMIT,
        ),
        cost_estimate=pl.CostEstimate(
            flops=int(flops), transcendentals=0, bytes_accessed=int(bytes_accessed)),
    )(xf, w_mat, b_col)

    # Single fused compaction: drop batch pad + 384->288 lane pad + the 2 pad columns per row.
    out4 = out[:N, :, :H * Wp].reshape(N, Cout, H, Wp)
    return lax.slice(out4, (0, 0, 0, 0), (N, Cout, H, W))


# --------------------------------------------------------------------------
# Flat-buffer helpers for the foreach-style EMA update
# --------------------------------------------------------------------------
def _flat_buffer_geometry(n_params):
    rows = -(-n_params // LANE)
    rows = ((rows + 7) // 8) * 8                          # sublane multiple
    tile_rows = min(MAX_TILE_ROWS, rows)
    if rows >= 16 and rows // tile_rows < 2:              # aim for >=2 grid steps (v7x: 2 TCs)
        tile_rows = ((rows // 2 + 7) // 8) * 8
    rows = -(-rows // tile_rows) * tile_rows              # whole number of tiles
    return rows, tile_rows


def _flatten_padded(params, rows):
    leaves = jax.tree_util.tree_leaves(params)
    flat = jnp.concatenate([jnp.ravel(l).astype(jnp.float32) for l in leaves])
    flat = jnp.pad(flat, (0, rows * LANE - flat.shape[0]))
    return flat.reshape(rows, LANE)


def _unflatten_padded(flat2d, template):
    flat = flat2d.reshape(-1)
    leaves, treedef = jax.tree_util.tree_flatten(template)
    out, off = [], 0
    for leaf in leaves:
        out.append(flat[off:off + leaf.size].reshape(leaf.shape).astype(leaf.dtype))
        off += leaf.size
    return jax.tree_util.tree_unflatten(treedef, out)


# --------------------------------------------------------------------------
# EMA module (functional analogue of the PyTorch wrapper)
# --------------------------------------------------------------------------
class EMAPallas:
    def __init__(self, orig_params, beta=BETA):
        self.beta = float(beta)
        n_params = sum(l.size for l in jax.tree_util.tree_leaves(orig_params))
        self._rows, self._tile_rows = _flat_buffer_geometry(n_params)
        self._beta_arr = jnp.full((1,), self.beta, dtype=jnp.float32)
        self.training = True

        # Original-model params: structured (for the conv) + permanent padded flat mirror
        # (for the EMA kernel).  The mirror is refreshed only when params are assigned,
        # never inside the per-step jit.
        self._orig_params = None
        self._orig_flat = None
        self.orig_params = orig_params

        # EMA state lives permanently as the padded flat f32 buffer (no per-step re-flatten).
        self.ema_flat = jnp.array(self._orig_flat)        # independent copy (ema_flat is donated)
        self._ema_struct = jax.tree_util.tree_map(jnp.copy, orig_params)   # cached eval view

        tile_rows = self._tile_rows

        def train_step(ema_flat, beta_arr, orig_flat, w, b, x):
            # EMA update and the conv on the *original* params are independent; cost estimates
            # on both pallas_calls let XLA overlap them inside this jit.
            new_ema = ema_update_flat(ema_flat, orig_flat, beta_arr, tile_rows=tile_rows)
            y = conv_relu_pallas(x, w, b)
            return new_ema, y

        self._train_step = jax.jit(train_step, donate_argnums=(0,))
        self._eval_step = jax.jit(lambda w, b, x: conv_relu_pallas(x, w, b))

    # --- original params: keep structured + flat mirror in sync -----------
    @property
    def orig_params(self):
        return self._orig_params

    @orig_params.setter
    def orig_params(self, params):
        self._orig_params = params
        self._orig_flat = _flatten_padded(params, self._rows)

    # --- EMA params (structured view, rebuilt lazily) ----------------------
    @property
    def ema_params(self):
        if self._ema_struct is None:
            self._ema_struct = _unflatten_padded(self.ema_flat, self._orig_params)
        return self._ema_struct

    def __call__(self, x):
        if self.training:
            self.ema_flat, y = self._train_step(
                self.ema_flat, self._beta_arr, self._orig_flat,
                self._orig_params["w"], self._orig_params["b"], x)
            self._ema_struct = None                       # structured EMA view is stale now
            return y
        p = self.ema_params
        return self._eval_step(p["w"], p["b"], x)


# --------------------------------------------------------------------------
if __name__ == "__main__":
    key = jax.random.PRNGKey(0)
    kx, kw, kb = jax.random.split(key, 3)

    N, C, H, W, Cout = 2, 4, 16, 16, 8
    x = jax.random.normal(kx, (N, C, H, W), dtype=jnp.float32)

    # Deterministic synthetic inner-model parameters: Conv2d(4, 8, 3, padding=1)
    orig_params = {
        "w": jax.random.normal(kw, (Cout, C, 3, 3), dtype=jnp.float32) * 0.1,
        "b": jax.random.normal(kb, (Cout,), dtype=jnp.float32) * 0.1,
    }

    ema = EMAPallas(orig_params, beta=BETA)

    # Perturb the original params so the EMA update is non-trivial (simulates a train step).
    ema.orig_params = jax.tree_util.tree_map(lambda p: p + 0.05, ema.orig_params)

    # training-mode forward: in-place EMA update (Pallas) + original-model conv (Pallas)
    y_train = jax.block_until_ready(ema(x))

    # eval-mode forward: EMA-model conv (Pallas)
    ema.training = False
    y_eval = jax.block_until_ready(ema(x))

    # --- reference checks (plain JAX) ---
    def conv_ref(xx, w, b):
        out = lax.conv_general_dilated(
            xx, w, window_strides=(1, 1), padding=((1, 1), (1, 1)),
            dimension_numbers=("NCHW", "OIHW", "NCHW"))
        return jnp.maximum(out + b.reshape(1, -1, 1, 1), 0.0)

    beta32 = jnp.float32(BETA)
    ref_ema = jax.tree_util.tree_map(
        lambda e0, o: beta32 * e0 + (jnp.float32(1.0) - beta32) * o,
        orig_params, ema.orig_params)
    ref_train = conv_ref(x, ema.orig_params["w"], ema.orig_params["b"])
    ref_eval = conv_ref(x, ref_ema["w"], ref_ema["b"])

    assert y_train.shape == (N, Cout, H, W) and y_eval.shape == (N, Cout, H, W)
    assert jnp.allclose(ema.ema_params["w"], ref_ema["w"], atol=1e-6, rtol=1e-6)
    assert jnp.allclose(ema.ema_params["b"], ref_ema["b"], atol=1e-6, rtol=1e-6)
    assert jnp.allclose(y_train, ref_train, atol=2e-4, rtol=2e-4)
    assert jnp.allclose(y_eval, ref_eval, atol=2e-4, rtol=2e-4)

    print("KERNEL_OK")
</pallas_src>

<mosaic_0001>
module attributes {stable_mosaic.version = 11 : i64} {
  func.func @_ema_update_kernel(%arg0: i32, %arg1: memref<8x512xf32, #tpu.memory_space<vmem>>, %arg2: memref<8x512xf32, #tpu.memory_space<vmem>>, %arg3: memref<1xf32, #tpu.memory_space<smem>>, %arg4: memref<8x512xf32, #tpu.memory_space<vmem>>) attributes {dimension_semantics = [#tpu.dimension_semantics<parallel>], iteration_bounds = array<i64: 1>, scalar_prefetch = 0 : i64, scratch_operands = 0 : i64, tpu.core_type = #tpu.core_type<tc>, window_params = [{transform_indices = @transform_0, window_bounds = array<i64: 8, 512>}, {transform_indices = @transform_1, window_bounds = array<i64: 8, 512>}, {transform_indices = @transform_2, window_bounds = array<i64: 1>}, {transform_indices = @transform_3, window_bounds = array<i64: 8, 512>}]} {
    %c0 = arith.constant 0 : index
    %0 = memref.load %arg3[%c0] : memref<1xf32, #tpu.memory_space<smem>>
    %c0_0 = arith.constant 0 : index
    %c0_1 = arith.constant 0 : index
    %1 = vector.load %arg1[%c0_0, %c0_1] : memref<8x512xf32, #tpu.memory_space<vmem>>, vector<8x512xf32>
    %2 = vector.broadcast %0 : f32 to vector<8x512xf32>
    %3 = arith.mulf %2, %1 : vector<8x512xf32>
    %cst = arith.constant 1.000000e+00 : f32
    %4 = arith.subf %cst, %0 : f32
    %c0_2 = arith.constant 0 : index
    %c0_3 = arith.constant 0 : index
    %5 = vector.load %arg2[%c0_2, %c0_3] : memref<8x512xf32, #tpu.memory_space<vmem>>, vector<8x512xf32>
    %6 = vector.broadcast %4 : f32 to vector<8x512xf32>
    %7 = arith.mulf %6, %5 : vector<8x512xf32>
    %8 = arith.addf %3, %7 : vector<8x512xf32>
    %c0_4 = arith.constant 0 : index
    %c0_5 = arith.constant 0 : index
    %9 = vector.load %arg4[%c0_4, %c0_5] : memref<8x512xf32, #tpu.memory_space<vmem>>, vector<8x512xf32>
    tpu.vector_store %arg4[%c0_4, %c0_5], %8 {strides = array<i32>} : memref<8x512xf32, #tpu.memory_space<vmem>>, vector<8x512xf32>,
    return
  }
  func.func @transform_0(%arg0: i32) -> (i32, i32) {
    %c0_i32 = arith.constant 0 : i32
    %c0_i32_0 = arith.constant 0 : i32
    return %arg0, %c0_i32 : i32, i32
  }
  func.func @transform_1(%arg0: i32) -> (i32, i32) {
    %c0_i32 = arith.constant 0 : i32
    %c0_i32_0 = arith.constant 0 : i32
    return %arg0, %c0_i32 : i32, i32
  }
  func.func @transform_2(%arg0: i32) -> i32 {
    %c0_i32 = arith.constant 0 : i32
    %c0_i32_0 = arith.constant 0 : i32
    return %c0_i32 : i32
  }
  func.func @transform_3(%arg0: i32) -> (i32, i32) {
    %c0_i32 = arith.constant 0 : i32
    %c0_i32_0 = arith.constant 0 : i32
    return %arg0, %c0_i32 : i32, i32
  }
}

module attributes {stable_mosaic.version = 11 : i64} {
  func.func @_conv_relu_kernel(%arg0: i32, %arg1: memref<1x4x384xf32, #tpu.memory_space<vmem>>, %arg2: memref<8x36xf32, #tpu.memory_space<vmem>>, %arg3: memref<8x1xf32, #tpu.memory_space<vmem>>, %arg4: memref<1x8x384xf32, #tpu.memory_space<vmem>>, %arg5: memref<36x384xf32, #tpu.memory_space<vmem>>) attributes {dimension_semantics = [#tpu.dimension_semantics<parallel>], iteration_bounds = array<i64: 2>, scalar_prefetch = 0 : i64, scratch_operands = 1 : i64, tpu.core_type = #tpu.core_type<tc>, window_params = [{transform_indices = @transform_0, window_bounds = array<i64: 1, 4, 384>}, {pipeline_mode = #tpu.pipeline_mode<synchronous>, transform_indices = @transform_1, window_bounds = array<i64: 8, 36>}, {pipeline_mode = #tpu.pipeline_mode<synchronous>, transform_indices = @transform_2, window_bounds = array<i64: 8, 1>}, {transform_indices = @transform_3, window_bounds = array<i64: 1, 8, 384>}]} {
    %c0 = arith.constant 0 : index
    %c0_0 = arith.constant 0 : index
    %c0_1 = arith.constant 0 : index
    %0 = vector.load %arg1[%c0, %c0_0, %c0_1] : memref<1x4x384xf32, #tpu.memory_space<vmem>>, vector<1x4x384xf32>
    %1 = vector.shape_cast %0 : vector<1x4x384xf32> to vector<4x384xf32>
    %c0_2 = arith.constant 0 : index
    %c0_3 = arith.constant 0 : index
    %2 = vector.load %arg5[%c0_2, %c0_3] : memref<36x384xf32, #tpu.memory_space<vmem>>, vector<4x384xf32>
    tpu.vector_store %arg5[%c0_2, %c0_3], %1 {strides = array<i32>} : memref<36x384xf32, #tpu.memory_space<vmem>>, vector<4x384xf32>,
    %c383_i32 = arith.constant 383 : i32
    %3 = tpu.dynamic_rotate %1 by %c383_i32 dim 1 : vector<4x384xf32>, i32 -> vector<4x384xf32>
    %c4 = arith.constant 4 : index
    %c0_4 = arith.constant 0 : index
    %4 = vector.load %arg5[%c4, %c0_4] : memref<36x384xf32, #tpu.memory_space<vmem>>, vector<4x384xf32>
    tpu.vector_store %arg5[%c4, %c0_4], %3 {strides = array<i32>} : memref<36x384xf32, #tpu.memory_space<vmem>>, vector<4x384xf32>,
    %c382_i32 = arith.constant 382 : i32
    %5 = tpu.dynamic_rotate %1 by %c382_i32 dim 1 : vector<4x384xf32>, i32 -> vector<4x384xf32>
    %c8 = arith.constant 8 : index
    %c0_5 = arith.constant 0 : index
    %6 = vector.load %arg5[%c8, %c0_5] : memref<36x384xf32, #tpu.memory_space<vmem>>, vector<4x384xf32>
    tpu.vector_store %arg5[%c8, %c0_5], %5 {strides = array<i32>} : memref<36x384xf32, #tpu.memory_space<vmem>>, vector<4x384xf32>,
    %c366_i32 = arith.constant 366 : i32
    %7 = tpu.dynamic_rotate %1 by %c366_i32 dim 1 : vector<4x384xf32>, i32 -> vector<4x384xf32>
    %c12 = arith.constant 12 : index
    %c0_6 = arith.constant 0 : index
    %8 = vector.load %arg5[%c12, %c0_6] : memref<36x384xf32, #tpu.memory_space<vmem>>, vector<4x384xf32>
    tpu.vector_store %arg5[%c12, %c0_6], %7 {strides = array<i32>} : memref<36x384xf32, #tpu.memory_space<vmem>>, vector<4x384xf32>,
    %c365_i32 = arith.constant 365 : i32
    %9 = tpu.dynamic_rotate %1 by %c365_i32 dim 1 : vector<4x384xf32>, i32 -> vector<4x384xf32>
    %c16 = arith.constant 16 : index
    %c0_7 = arith.constant 0 : index
    %10 = vector.load %arg5[%c16, %c0_7] : memref<36x384xf32, #tpu.memory_space<vmem>>, vector<4x384xf32>
    tpu.vector_store %arg5[%c16, %c0_7], %9 {strides = array<i32>} : memref<36x384xf32, #tpu.memory_space<vmem>>, vector<4x384xf32>,
    %c364_i32 = arith.constant 364 : i32
    %11 = tpu.dynamic_rotate %1 by %c364_i32 dim 1 : vector<4x384xf32>, i32 -> vector<4x384xf32>
    %c20 = arith.constant 20 : index
    %c0_8 = arith.constant 0 : index
    %12 = vector.load %arg5[%c20, %c0_8] : memref<36x384xf32, #tpu.memory_space<vmem>>, vector<4x384xf32>
    tpu.vector_store %arg5[%c20, %c0_8], %11 {strides = array<i32>} : memref<36x384xf32, #tpu.memory_space<vmem>>, vector<4x384xf32>,
    %c348_i32 = arith.constant 348 : i32
    %13 = tpu.dynamic_rotate %1 by %c348_i32 dim 1 : vector<4x384xf32>, i32 -> vector<4x384xf32>
    %c24 = arith.constant 24 : index
    %c0_9 = arith.constant 0 : index
    %14 = vector.load %arg5[%c24, %c0_9] : memref<36x384xf32, #tpu.memory_space<vmem>>, vector<4x384xf32>
    tpu.vector_store %arg5[%c24, %c0_9], %13 {strides = array<i32>} : memref<36x384xf32, #tpu.memory_space<vmem>>, vector<4x384xf32>,
    %c347_i32 = arith.constant 347 : i32
    %15 = tpu.dynamic_rotate %1 by %c347_i32 dim 1 : vector<4x384xf32>, i32 -> vector<4x384xf32>
    %c28 = arith.constant 28 : index
    %c0_10 = arith.constant 0 : index
    %16 = vector.load %arg5[%c28, %c0_10] : memref<36x384xf32, #tpu.memory_space<vmem>>, vector<4x384xf32>
    tpu.vector_store %arg5[%c28, %c0_10], %15 {strides = array<i32>} : memref<36x384xf32, #tpu.memory_space<vmem>>, vector<4x384xf32>,
    %c346_i32 = arith.constant 346 : i32
    %17 = tpu.dynamic_rotate %1 by %c346_i32 dim 1 : vector<4x384xf32>, i32 -> vector<4x384xf32>
    %c32 = arith.constant 32 : index
    %c0_11 = arith.constant 0 : index
    %18 = vector.load %arg5[%c32, %c0_11] : memref<36x384xf32, #tpu.memory_space<vmem>>, vector<4x384xf32>
    tpu.vector_store %arg5[%c32, %c0_11], %17 {strides = array<i32>} : memref<36x384xf32, #tpu.memory_space<vmem>>, vector<4x384xf32>,
    %c0_12 = arith.constant 0 : index
    %c0_13 = arith.constant 0 : index
    %19 = vector.load %arg2[%c0_12, %c0_13] : memref<8x36xf32, #tpu.memory_space<vmem>>, vector<8x36xf32>
    %c0_14 = arith.constant 0 : index
    %c0_15 = arith.constant 0 : index
    %20 = vector.load %arg5[%c0_14, %c0_15] : memref<36x384xf32, #tpu.memory_space<vmem>>, vector<36x384xf32>
    %cst = arith.constant dense<0.000000e+00> : vector<8x384xf32>
    %21 = tpu.matmul %19, %20, %cst {dimension_numbers = #tpu.dot_dimension_numbers<[1], [0], [0], [1], [0, 0, 1, 1], [], []>} : vector<8x36xf32>, vector<36x384xf32>, vector<8x384xf32> -> vector<8x384xf32>
    %c0_16 = arith.constant 0 : index
    %c0_17 = arith.constant 0 : index
    %22 = vector.load %arg3[%c0_16, %c0_17] : memref<8x1xf32, #tpu.memory_space<vmem>>, vector<8x1xf32>
    %23 = vector.broadcast %22 : vector<8x1xf32> to vector<8x384xf32>
    %24 = arith.addf %21, %23 : vector<8x384xf32>
    %cst_18 = arith.constant 0.000000e+00 : f32
    %25 = vector.broadcast %cst_18 : f32 to vector<8x384xf32>
    %26 = arith.maximumf %24, %25 : vector<8x384xf32>
    %c0_19 = arith.constant 0 : index
    %c0_20 = arith.constant 0 : index
    %c0_21 = arith.constant 0 : index
    %27 = vector.load %arg4[%c0_19, %c0_20, %c0_21] : memref<1x8x384xf32, #tpu.memory_space<vmem>>, vector<1x8x384xf32>
    %28 = vector.shape_cast %27 : vector<1x8x384xf32> to vector<8x384xf32>
    %29 = vector.shape_cast %26 : vector<8x384xf32> to vector<1x8x384xf32>
    tpu.vector_store %arg4[%c0_19, %c0_20, %c0_21], %29 {strides = array<i32>} : memref<1x8x384xf32, #tpu.memory_space<vmem>>, vector<1x8x384xf32>,
    return
  }
  func.func @transform_0(%arg0: i32) -> (i32, i32, i32) {
    %c0_i32 = arith.constant 0 : i32
    %c0_i32_0 = arith.constant 0 : i32
    %c0_i32_1 = arith.constant 0 : i32
    return %arg0, %c0_i32, %c0_i32_0 : i32, i32, i32
  }
  func.func @transform_1(%arg0: i32) -> (i32, i32) {
    %c0_i32 = arith.constant 0 : i32
    %c0_i32_0 = arith.constant 0 : i32
    %c0_i32_1 = arith.constant 0 : i32
    return %c0_i32, %c0_i32_0 : i32, i32
  }
  func.func @transform_2(%arg0: i32) -> (i32, i32) {
    %c0_i32 = arith.constant 0 : i32
    %c0_i32_0 = arith.constant 0 : i32
    %c0_i32_1 = arith.constant 0 : i32
    return %c0_i32, %c0_i32_0 : i32, i32
  }
  func.func @transform_3(%arg0: i32) -> (i32, i32, i32) {
    %c0_i32 = arith.constant 0 : i32
    %c0_i32_0 = arith.constant 0 : i32
    %c0_i32_1 = arith.constant 0 : i32
    return %arg0, %c0_i32, %c0_i32_0 : i32, i32, i32
  }
}

</mosaic_0001>

<bundles_post_ra>
// kernel: train_step.2
= control target key start
LH: loop header
LB: loop body
LE: loop exit
PB: predicated region body
PF: predicated region fallthrough
CT: control target
= control target key end

     0   :  { %9 = vsyncpa [#allocation4], 0  ;;  %s224_s0 = inlined_call_operand.hbm [shape: f32[8,512], index: 0, kind: input, shape index: {}, may-alias: {0,3}]   ;;  %s225_s1 = inlined_call_operand.hbm [shape: f32[8,512], index: 1, kind: input, shape index: {}]   ;;  %s226_s2 = inlined_call_operand.<no memory space> [shape: f32[1], index: 2, kind: input, shape index: {}]   ;;  %s227_s3 = inlined_call_operand.hbm [shape: f32[8,512], index: 3, kind: output, shape index: {}, may-alias: {0,3}]  }
   0x1   :  { %10 = vsyncpa [#allocation7], 0 }
   0x2   :  { %11 = vsyncpa [#allocation5], 0  ;;  %s159_s12 = smov [#allocation3]   ;;  %s160_s14 = smov [#allocation6]  }
   0x3   :  { %s18_s13 = sshll.u32 %s159_s12, 4  ;;  %s28_s15 = sshll.u32 %s160_s14, 4  ;;  %s19_s13 = int_to_ptr.vmem [resolvable:$true] %s18_s13  ;;  %s29_s15 = int_to_ptr.vmem [resolvable:$true] %s28_s15 }
   0x4   :  { %s87_s18 = scalar_lea.hbm %s224_s0, 512 }
   0x5   :  { %p88_p0 = scmp.ne.s32.totalorder %s224_s0, %s87_s18  ;;  %p91_p1 = scmp.lt.u32.totalorder %s87_s18, %s224_s0 }
   0x7   :  { %p93_p2 = pnand %p91_p1, %p88_p0 }
   0x9   :  { %96 = shalt.err (!%p93_p2)
}
   0xa   :  { %s97_s23 = scalar_lea.vmem %s19_s13, 512  ;;  %p102_p4 = scmp.lt.s32.totalorder %s19_s13, %s19_s13 }
   0xb   :  { %p98_p3 = scmp.ne.s32.totalorder %s19_s13, %s97_s23  ;;  %p103_p5 = scmp.lt.s32.totalorder %s97_s23, %s97_s23 }
   0xd   :  { %p104_p6 = por %p103_p5, %p102_p4 }
   0xf   :  { %p105_p7 = pnand %p104_p6, %p98_p3 }
  0x11   :  { %108 = shalt.err (!%p105_p7)
}
  0x12   :  { %21 = dma.hbm_to_vmem [thread:$0]  %s224_s0, 512, %s19_s13, [#allocation4]  }
  0x13   :  { %s109_s28 = scalar_lea.hbm %s225_s1, 512 }
  0x14   :  { %p110_p8 = scmp.ne.s32.totalorder %s225_s1, %s109_s28  ;;  %p113_p9 = scmp.lt.u32.totalorder %s109_s28, %s225_s1 }
  0x16   :  { %p115_p10 = pnand %p113_p9, %p110_p8 }
  0x18   :  { %118 = shalt.err (!%p115_p10)
}
  0x19   :  { %s119_s6 = scalar_lea.vmem %s29_s15, 512  ;;  %p124_p12 = scmp.lt.s32.totalorder %s29_s15, %s29_s15 }
  0x1a   :  { %p120_p11 = scmp.ne.s32.totalorder %s29_s15, %s119_s6  ;;  %p125_p13 = scmp.lt.s32.totalorder %s119_s6, %s119_s6 }
  0x1c   :  { %p126_p0 = por %p125_p13, %p124_p12 }
  0x1e   :  { %p127_p1 = pnand %p126_p0, %p120_p11 }
  0x20   :  { %130 = shalt.err (!%p127_p1)
}
  0x21   :  { %31 = dma.hbm_to_vmem [thread:$0]  %s225_s1, 512, %s29_s15, [#allocation7]  }
  0x22   :  { %153 = dma.done.wait [#allocation4], 512  }
  0x23   :  { %154 = vsyncadd [#allocation4], 4294966784 }
  0x24   :  { %155 = dma.done.wait [#allocation7], 512  }
  0x25   :  { %156 = vsyncadd [#allocation7], 4294966784  ;;  %s50_s10 = ssub.f32 1.0, %s226_s2  ;;  %v45_v0 = vstv %s226_s2  ;;  %v41_v2 = vld [vmem:[#allocation3] sm:$0xff]  ;;  %v42_v4 = vld [vmem:[#allocation3 + $0x8] sm:$0xff]  ;;  %s161_s1 = smov [#allocation8]  }
  0x26   :  { %v51_v3 = vld [vmem:[#allocation6] sm:$0xff]  ;;  %v46_v5 = vmul.f32 %v45_v0, %v41_v2  ;;  %v47_v7 = vmul.f32 %v45_v0, %v42_v4  ;;  %v52_v8 = vld [vmem:[#allocation6 + $0x8] sm:$0xff]  ;;  %v43_v9 = vld [vmem:[#allocation3 + $0x10] sm:$0xff]  ;;  %s74_s13 = sshll.u32 %s161_s1, 4  ;;  %s75_s13 = int_to_ptr.vmem [resolvable:$true] %s74_s13 }
  0x27   :  { %v55_v1 = vstv %s50_s10  ;;  %v53_v10 = vld [vmem:[#allocation6 + $0x10] sm:$0xff]  ;;  %v48_v12 = vmul.f32 %v45_v0, %v43_v9  ;;  %v44_v14 = vld [vmem:[#allocation3 + $0x18] sm:$0xff]  ;;  %s131_s2 = scalar_lea.vmem %s75_s13, 512  ;;  %p136_p3 = scmp.lt.s32.totalorder %s75_s13, %s75_s13 }
  0x28   :  { %v56_v6 = vmul.f32 %v55_v1, %v51_v3  ;;  %v57_v11 = vmul.f32 %v55_v1, %v52_v8  ;;  %v58_v13 = vmul.f32 %v55_v1, %v53_v10  ;;  %v54_v15 = vld [vmem:[#allocation6 + $0x18] sm:$0xff]  ;;  %v49_v17 = vmul.f32 %v45_v0, %v44_v14  ;;  %p132_p2 = scmp.ne.s32.totalorder %s75_s13, %s131_s2  ;;  %p137_p4 = scmp.lt.s32.totalorder %s131_s2, %s131_s2 }
  0x29   :  { %v59_v18 = vmul.f32 %v55_v1, %v54_v15 }
  0x2a   :  { %v60_v16 = vadd.f32 %v56_v6, %v46_v5  ;;  %v61_v19 = vadd.f32 %v57_v11, %v47_v7  ;;  %v62_v20 = vadd.f32 %v58_v13, %v48_v12  ;;  %p138_p5 = por %p137_p4, %p136_p3 }
  0x2b   :  { %v63_v21 = vadd.f32 %v59_v18, %v49_v17 }
  0x2c   :  { %64 = vst [vmem:[#allocation8] sm:$0xff] %v60_v16  ;;  %65 = vst [vmem:[#allocation8 + $0x8] sm:$0xff] %v61_v19  ;;  %p139_p6 = pnand %p138_p5, %p132_p2 }
  0x2d   :  { %66 = vst [vmem:[#allocation8 + $0x10] sm:$0xff] %v62_v20  ;;  %67 = vst [vmem:[#allocation8 + $0x18] sm:$0xff] %v63_v21 }
  0x2e   :  { %142 = shalt.err (!%p139_p6)
}
  0x2f   :  { %s143_s16 = scalar_lea.hbm %s227_s3, 512 }
  0x30   :  { %p144_p7 = scmp.ne.s32.totalorder %s227_s3, %s143_s16  ;;  %p147_p8 = scmp.lt.u32.totalorder %s143_s16, %s227_s3 }
  0x32   :  { %p149_p9 = pnand %p147_p8, %p144_p7 }
  0x34   :  { %152 = shalt.err (!%p149_p9)
}
  0x35   :  { %77 = dma.vmem_to_hbm [thread:$0]  %s75_s13, 512, %s227_s3, [#allocation5]  }
  0x36   :  { %157 = dma.done.wait [#allocation5], 512  }
  0x37   :  { %158 = vsyncadd [#allocation5], 4294966784 }
  0x38   :  { %81 = vsyncpa [#allocation4], 1 }
  0x39   :  { %82 = vsyncpa [#allocation7], 1 }
  0x3a   :  { %83 = vsyncpa [#allocation5], 1 }

// kernel: train_step.3
= control target key start
LH: loop header
LB: loop body
LE: loop exit
PB: predicated region body
PF: predicated region fallthrough
CT: control target
= control target key end

     0   :  { %s670_s12 = smov 0   ;;  %s724_s0 = inlined_call_operand.vmem [shape: f32[2,4,384], index: 0, kind: input, shape index: {}]   ;;  %s725_s1 = inlined_call_operand.vmem [shape: f32[8,36], index: 1, kind: input, shape index: {}]   ;;  %s726_s2 = inlined_call_operand.vmem [shape: f32[8,1], index: 2, kind: input, shape index: {}]   ;;  %s727_s3 = inlined_call_operand.vmem [shape: f32[2,8,384], index: 3, kind: output, shape index: {}]  }
   0x1 LB: > { %s559_s13 = sadd.s32 4294967295, %s636_s12   ;;  %p563_p0 = scmp.ge.s32.totalorder %s636_s12, 1  ;;  %s636_s12 = sphi %s670_s12, %s13_s12  }
   0x2   : > { %p137_p1 = scmp.lt.s32.totalorder %s636_s12, 3 }
   0x4   : > { %p138_p2 = pnand %p563_p0, %p137_p1 }
   0x5   : > { %p161_p3 = scmp.lt.s32.totalorder (!%p138_p2), %s559_s13, 1  ;;  %s638_s18 = smov (!%p138_p2), 110   ;;  %v641_v3 = vmov (!%p138_p2), 0.0|0.0   ;;  %v647_v4 = vmov (!%p138_p2), 0.0   ;;  %vm648_vm0 = vmmov (!%p138_p2), 0   ;;  %v649_v5 = vmov (!%p138_p2), 0  }
   0x6   : > { %141 = sbr.rel (%p138_p2) target bundleno = 407 (0x197), region = 32  ;;  %s639_s19 = smov (!%p138_p2), 127   ;;  %600 = vmatprep.subr.bf16.mxu1 (!%p138_p2), %v641_v3  ;;  %421 = vmatprep.mubr.f32.mxu0 (!%p138_p2), %v647_v4  ;;  %v337_v6 = vld [vmem:[%s726_s2] sm:$0xff] (!%p138_p2)  ;;  %v185_v7 = vlaneseq (!%p138_p2)  ;;  %vm347_vm9 = vcmask (!%p138_p2), 1043456   ;;  %vm343_vm10 = vcmask (!%p138_p2), 293888  }
   0x7   : > { %s640_s20 = smov (!%p138_p2), 126   ;;  %s642_s21 = smov (!%p138_p2), 108   ;;  %589 = vmatprep.mubr.msk.f32.mxu1 (!%p138_p2), %vm648_vm0, %v647_v4  ;;  %628 = vset.pattern.permute.xlu0 (!%p138_p2), %v649_v5 }
   0x8   : > { %s643_s22 = smov (!%p138_p2), 91   ;;  %s644_s23 = smov (!%p138_p2), 109   ;;  %v690_v8 = vand.u32 (!%p138_p2), 127, %v185_v7 }
   0x9   : > { %s645_s24 = smov (!%p138_p2), 92   ;;  %s646_s25 = smov (!%p138_p2), 90  }
   0xa   : > { %vm222_vm1 = vcmp.lt.s32.totalorder (!%p138_p2), %v690_v8, 110  ;;  %vm187_vm2 = vcmp.lt.s32.totalorder (!%p138_p2), %v690_v8, 127  ;;  %vm209_vm3 = vcmp.lt.s32.totalorder (!%p138_p2), %v690_v8, 126  ;;  %vm257_vm4 = vcmp.lt.s32.totalorder (!%p138_p2), %v690_v8, 108 }
   0xb   : > { %vm292_vm5 = vcmp.lt.s32.totalorder (!%p138_p2), %v690_v8, 91  ;;  %vm244_vm6 = vcmp.lt.s32.totalorder (!%p138_p2), %v690_v8, 109  ;;  %vm279_vm7 = vcmp.lt.s32.totalorder (!%p138_p2), %v690_v8, 92  ;;  %vm314_vm8 = vcmp.lt.s32.totalorder (!%p138_p2), %v690_v8, 90 }
   0xd   : > { %s729_s13 = smov (!%p161_p3, %s559_s13), 1 }
   0xe   : > { %s606_s14 = smul.u32 12, %s729_s13 }
   0xf   : > { %s607_s30 = smul.u32 24, %s729_s13 }
  0x10   : > { %s165_s17 = scalar_lea.vmem %s724_s0, %s606_s14 }
  0x11   : > { %v172_v0 = vld [vmem:[%s165_s17 + $0x8] sm:$0xf]  ;;  %v171_v1 = vld [vmem:[%s165_s17] sm:$0xff]  ;;  %s170_s6 = scalar_lea.vmem %s727_s3, %s607_s30 }
  0x12   : > { %220 = vrot.lane.b32.xlu1 %v172_v0, %s638_s18  ;;  %176 = vst [vmem:[#allocation2] sm:$0xf] %v171_v1  ;;  %178 = vst [vmem:[#allocation2 + $0x10] sm:$0xf] %v172_v0  ;;  %183 = vrot.lane.b32.xlu0 %v172_v0, %s639_s19  ;;  %v174_v2 = vcombine.high %v171_v1, %v171_v1 }
  0x14   : > { %177 = vst [vmem:[#allocation2 + $0x8] sm:$0xf] %v174_v2 }
  0x16   : > { %216 = vrot.lane.b32.xlu1 %v171_v1, %s638_s18  ;;  %179 = vrot.lane.b32.xlu0 %v171_v1, %s639_s19 }
  0x1a   : > { %218 = vrot.lane.b32.xlu1 %v174_v2, %s638_s18  ;;  %181 = vrot.lane.b32.xlu0 %v174_v2, %s639_s19 }
  0x1e   : > { %207 = vrot.lane.b32.xlu1 %v172_v0, %s640_s20  ;;  %205 = vrot.lane.b32.xlu0 %v174_v2, %s640_s20 }
  0x22   : > { %253 = vrot.lane.b32.xlu1 %v174_v2, %s642_s21  ;;  %203 = vrot.lane.b32.xlu0 %v171_v1, %s640_s20 }
  0x26   : > { %288 = vrot.lane.b32.xlu1 %v174_v2, %s643_s22  ;;  %255 = vrot.lane.b32.xlu0 %v172_v0, %s642_s21 }
  0x2a   : > { %251 = vrot.lane.b32.xlu1 %v171_v1, %s642_s21  ;;  %290 = vrot.lane.b32.xlu0 %v172_v0, %s643_s22 }
  0x2e   : > { %240 = vrot.lane.b32.xlu1 %v174_v2, %s644_s23  ;;  %286 = vrot.lane.b32.xlu0 %v171_v1, %s643_s22 }
  0x32   : > { %275 = vrot.lane.b32.xlu1 %v174_v2, %s645_s24  ;;  %242 = vrot.lane.b32.xlu0 %v172_v0, %s644_s23 }
  0x36   : > { %238 = vrot.lane.b32.xlu1 %v171_v1, %s644_s23  ;;  %277 = vrot.lane.b32.xlu0 %v172_v0, %s645_s24 }
  0x3a   : > { %310 = vrot.lane.b32.xlu1 %v174_v2, %s646_s25  ;;  %273 = vrot.lane.b32.xlu0 %v171_v1, %s645_s24 }
  0x3e   : > { %308 = vrot.lane.b32.xlu1 %v171_v1, %s646_s25  ;;  %312 = vrot.lane.b32.xlu0 %v172_v0, %s646_s25 }
  0x42   : > { %340 = vperm.xlu0 %628, %v337_v6  }
  0x84   : > { %v221_v9 = vpop.permute.xlu1 %220  ;;  %v184_v10 = vpop.permute.xlu0 %183 }
  0x88   : > { %v217_v11 = vpop.permute.xlu1 %216  ;;  %v180_v12 = vpop.permute.xlu0 %179 }
  0x89   : > { %v225_v13 = vsel %vm222_vm1, %v221_v9, %v217_v11  ;;  %v190_v14 = vsel %vm187_vm2, %v184_v10, %v180_v12 }
  0x8a   : > { %v231_v15 = vrot.slane %v225_v13, 4  ;;  %v196_v16 = vrot.slane %v190_v14, 4 }
  0x8c   : > { %237 = vst [vmem:[#allocation2 + $0x28] sm:$0xf0] %v231_v15  ;;  %202 = vst [vmem:[#allocation2 + $0x10] sm:$0xf0] %v196_v16  ;;  %v219_v17 = vpop.permute.xlu1 %218  ;;  %v182_v18 = vpop.permute.xlu0 %181 }
  0x8d   : > { %v223_v19 = vsel %vm222_vm1, %v219_v17, %v221_v9  ;;  %v224_v20 = vsel %vm222_vm1, %v217_v11, %v219_v17  ;;  %v188_v21 = vsel %vm187_vm2, %v182_v18, %v184_v10  ;;  %v189_v22 = vsel %vm187_vm2, %v180_v12, %v182_v18 }
  0x8e   : > { %v229_v23 = vrot.slane %v224_v20, 4  ;;  %v230_v24 = vrot.slane %v223_v19, 4  ;;  %v194_v25 = vrot.slane %v189_v22, 4  ;;  %v195_v26 = vrot.slane %v188_v21, 4 }
  0x90   : > { %235 = vst [vmem:[#allocation2 + $0x18] sm:$0xf0] %v229_v23  ;;  %236 = vst [vmem:[#allocation2 + $0x20] sm:$0xf0] %v230_v24  ;;  %v208_v27 = vpop.permute.xlu1 %207  ;;  %v206_v28 = vpop.permute.xlu0 %205 }
  0x91   : > { %200 = vst [vmem:[#allocation2] sm:$0xf0] %v194_v25  ;;  %201 = vst [vmem:[#allocation2 + $0x8] sm:$0xf0] %v195_v26  ;;  %v210_v29 = vsel %vm209_vm3, %v206_v28, %v208_v27  ;;  %v321_v26 = vld [vmem:[%s725_s1] sm:$0xff] }
  0x92   : > { %214 = vst [vmem:[#allocation2 + $0x20] sm:$0xf] %v210_v29 }
  0x93   : > { %v324_v46 = vld [vmem:[#allocation2 + $0x10] sm:$0xff] }
  0x94   : > { %v254_v30 = vpop.permute.xlu1 %253  ;;  %v204_v31 = vpop.permute.xlu0 %203 }
  0x95   : > { %v211_v32 = vsel %vm209_vm3, %v204_v31, %v206_v28  ;;  %v212_v33 = vsel %vm209_vm3, %v208_v27, %v204_v31 }
  0x96   : > { %213 = vst [vmem:[#allocation2 + $0x18] sm:$0xf] %v211_v32  ;;  %215 = vst [vmem:[#allocation2 + $0x28] sm:$0xf] %v212_v33 }
  0x98   : > { %v289_v34 = vpop.permute.xlu1 %288  ;;  %v256_v35 = vpop.permute.xlu0 %255  ;;  %v323_v37 = vld [vmem:[#allocation2 + $0x8] sm:$0xff]  ;;  %v322_v53 = vld [vmem:[#allocation2] sm:$0xff] }
  0x99   : > { %v258_v36 = vsel %vm257_vm4, %v254_v30, %v256_v35  ;;  %v326_v38 = vld [vmem:[#allocation2 + $0x20] sm:$0xff] }
  0x9a   : > { %v265_v39 = vrot.slane %v258_v36, 4  ;;  %v592_v40 = vpack.c.bf16 %v326_v38, %v323_v37 }
  0x9c   : > { %271 = vst [vmem:[#allocation2 + $0x38] sm:$0xf0] %v265_v39  ;;  %v252_v41 = vpop.permute.xlu1 %251  ;;  %v291_v42 = vpop.permute.xlu0 %290  ;;  %593 = vmatprep.subr.bf16.mxu0 %v592_v40 }
  0x9d   : > { %v259_v43 = vsel %vm257_vm4, %v252_v41, %v254_v30  ;;  %v260_v44 = vsel %vm257_vm4, %v256_v35, %v252_v41  ;;  %v293_v45 = vsel %vm292_vm5, %v289_v34, %v291_v42  ;;  %v327_v47 = vld [vmem:[#allocation2 + $0x28] sm:$0xff]  ;;  %v325_v48 = vld [vmem:[#allocation2 + $0x18] sm:$0xff] }
  0x9e   : > { %v264_v49 = vrot.slane %v259_v43, 4  ;;  %v266_v50 = vrot.slane %v260_v44, 4  ;;  %v300_v51 = vrot.slane %v293_v45, 4  ;;  %v601_v52 = vpack.c.bf16 %v327_v47, %v324_v46 }
  0x9f   : > { %v594_v54 = vpack.c.bf16 %v325_v48, %v322_v53 }
  0xa0   : > { %270 = vst [vmem:[#allocation2 + $0x30] sm:$0xf0] %v264_v49  ;;  %272 = vst [vmem:[#allocation2 + $0x40] sm:$0xf0] %v266_v50  ;;  %v241_v55 = vpop.permute.xlu1 %240  ;;  %602 = vmatpush3.bf16.msra.mxu1 %v601_v52  ;;  %v287_v56 = vpop.permute.xlu0 %286 }
  0xa1   : > { %306 = vst [vmem:[#allocation2 + $0x50] sm:$0xf0] %v300_v51  ;;  %v294_v57 = vsel %vm292_vm5, %v287_v56, %v289_v34  ;;  %v295_v58 = vsel %vm292_vm5, %v291_v42, %v287_v56  ;;  %595 = vmatpush1.bf16.msra.mxu0 %v594_v54  ;;  %603 = vmatprep.subr.bf16.mxu1 %v641_v3 }
  0xa2   : > { %v299_v59 = vrot.slane %v294_v57, 4  ;;  %v301_v60 = vrot.slane %v295_v58, 4 }
  0xa4   : > { %305 = vst [vmem:[#allocation2 + $0x48] sm:$0xf0] %v299_v59  ;;  %307 = vst [vmem:[#allocation2 + $0x58] sm:$0xf0] %v301_v60  ;;  %v276_v61 = vpop.permute.xlu1 %275  ;;  %v243_v62 = vpop.permute.xlu0 %242 }
  0xa5   : > { %v245_v63 = vsel %vm244_vm6, %v241_v55, %v243_v62 }
  0xa6   : > { %249 = vst [vmem:[#allocation2 + $0x38] sm:$0xf] %v245_v63 }
  0xa8   : > { %v239_v0 = vpop.permute.xlu1 %238  ;;  %v278_v1 = vpop.permute.xlu0 %277 }
  0xa9   : > { %v246_v2 = vsel %vm244_vm6, %v239_v0, %v241_v55  ;;  %v247_v5 = vsel %vm244_vm6, %v243_v62, %v239_v0  ;;  %v280_v6 = vsel %vm279_vm7, %v276_v61, %v278_v1 }
  0xaa   : > { %248 = vst [vmem:[#allocation2 + $0x30] sm:$0xf] %v246_v2  ;;  %250 = vst [vmem:[#allocation2 + $0x40] sm:$0xf] %v247_v5 }
  0xab   : > { %284 = vst [vmem:[#allocation2 + $0x50] sm:$0xf] %v280_v6 }
  0xac   : > { %v311_v3 = vpop.permute.xlu1 %310  ;;  %v274_v7 = vpop.permute.xlu0 %273 }
  0xad   : > { %v281_v9 = vsel %vm279_vm7, %v274_v7, %v276_v61  ;;  %v282_v10 = vsel %vm279_vm7, %v278_v1, %v274_v7  ;;  %v329_v16 = vld [vmem:[#allocation2 + $0x38] sm:$0xff] }
  0xae   : > { %283 = vst [vmem:[#allocation2 + $0x48] sm:$0xf] %v281_v9  ;;  %285 = vst [vmem:[#allocation2 + $0x58] sm:$0xf] %v282_v10 }
  0xb0   : > { %v309_v11 = vpop.permute.xlu1 %308  ;;  %v313_v12 = vpop.permute.xlu0 %312 }
  0xb1   : > { %v316_v13 = vsel %vm314_vm8, %v309_v11, %v311_v3  ;;  %v315_v14 = vsel %vm314_vm8, %v311_v3, %v313_v12  ;;  %v317_v15 = vsel %vm314_vm8, %v313_v12, %v309_v11  ;;  %v328_v19 = vld [vmem:[#allocation2 + $0x30] sm:$0xff]  ;;  %v330_v21 = vld [vmem:[#allocation2 + $0x40] sm:$0xff] }
  0xb2   : > { %v332_v17 = vld [vmem:[#allocation2 + $0x50] sm:$0xff]  ;;  %318 = vst [vmem:[#allocation2 + $0x60] sm:$0xf] %v316_v13  ;;  %319 = vst [vmem:[#allocation2 + $0x68] sm:$0xf] %v315_v14 }
  0xb3   : > { %320 = vst [vmem:[#allocation2 + $0x70] sm:$0xf] %v317_v15  ;;  %v596_v18 = vpack.c.bf16 %v332_v17, %v329_v16 }
  0xb5   : > { %597 = vmatprep.subr.bf16.mxu0 %v596_v18  ;;  %v331_v20 = vld [vmem:[#allocation2 + $0x48] sm:$0xff]  ;;  %v333_v22 = vld [vmem:[#allocation2 + $0x58] sm:$0xff] }
  0xb6   : > { %v598_v23 = vpack.c.bf16 %v331_v20, %v328_v19  ;;  %v604_v24 = vpack.c.bf16 %v333_v22, %v330_v21 }
  0xb8   : > { %599 = vmatpush1.bf16.msra.mxu0 %v598_v23  ;;  %605 = vmatpush3.bf16.msra.mxu1 %v604_v24 }
  0xb9   : > { %v335_v8 = vld [vmem:[#allocation2 + $0x68] sm:$0xf]  ;;  %587 = vmatprep.subr.mxu1 %v647_v4  ;;  %v334_v27 = vld [vmem:[#allocation2 + $0x60] sm:$0xf] }
  0xba   : > { %v336_v25 = vld [vmem:[#allocation2 + $0x70] sm:$0xf]  ;;  %566 = vmatprep.subr.msk.mxu0 %vm347_vm9, %v335_v8 }
  0xbc   : > { %567 = vmatpush1.msk.msra.mxu0 %vm347_vm9, %v334_v27  ;;  %588 = vmatpush3.msk.msra.mxu1 %vm347_vm9, %v336_v25 }
  0xbd   : > { %568 = vmatmul.mubr.msk.f32.vlgmr.msra.gmra.mrb[0].mxu0 %vm343_vm10, %v321_v26  ;;  %590 = vmatmul.mubr.msk.f32.vlgmr.msra.gmra.mrb[0].mxu1 %vm343_vm10, %v321_v26 }
  0xc1   : > { %v341_v28 = vpop.permute.xlu0 %340 }
 0x190   : > { %v494_v29 = vpop.f32.mrb[0].mxu1  ;;  %v423_v30 = vpop.f32.mrb[0].mxu0 }
 0x191   : > { %v495_v31 = vadd.f32 %v494_v29, %v341_v28  ;;  %v424_v32 = vadd.f32 %v423_v30, %v341_v28  ;;  %v425_v33 = vpop.f32.mrb[1].mxu0  ;;  %v591_v4 = vpop.f32.mrb[1].mxu1 }
 0x192   : > { %v426_v34 = vadd.f32 %v425_v33, %v341_v28 }
 0x193   : > { %v500_v35 = vmax.f32 %v495_v31, 0.0  ;;  %v498_v36 = vmax.f32 %v424_v32, 0.0 }
 0x194   : > { %v499_v37 = vmax.f32 %v426_v34, 0.0 }
 0x195   : > { %503 = vst [vmem:[%s170_s6 + $0x10] sm:$0xff] %v500_v35  ;;  %501 = vst [vmem:[%s170_s6] sm:$0xff] %v498_v36 }
 0x196   : > { %502 = vst [vmem:[%s170_s6 + $0x8] sm:$0xff] %v499_v37 }
 0x197 PF: > { %s13_s12 = sadd.s32 1, %s636_s12  }
 0x198   : > { %p10_p4 = scmp.ge.s32.totalorder %s13_s12, 4  }
 0x19a   :  { %12 = sbr.rel (!%p10_p4) target bundleno = 1 (0x1), region = 62 }

</bundles_post_ra>
